<compile_context>
chip_gen: v7x
topology: tpu7x:2x2x1
jax: 0.10.0
libtpu: 0.0.40
codegen_flags: <defaults>
</compile_context>

<pallas_src>
import math

import jax
import jax.numpy as jnp
from jax.experimental import pallas as pl
from jax.experimental.pallas import tpu as pltpu


def _round_up(x, m):
    return ((x + m - 1) // m) * m


def _make_mix_kernel(needed_d, n_d):
    """out[r, l] = bias[l] + sum_i roll(x, -d_i)[r, l] * coef_i[l].

    x_ref : (tile_r, 128) f32 VMEM  -- lane-dense packed input
    p_ref : (n_d + 1, 128) f32 VMEM -- rows 0..n_d-1 lane-periodic coefficients,
                                       row n_d = lane-periodic folded bias
    o_ref : (tile_r, 128) f32 VMEM  -- lane-dense packed output (unmasked stores)

    All arithmetic is full-width (8,128) vreg ops; the within-group shuffle is a
    lane rotation on the XLU.  Wrap-around lanes always carry a zero coefficient.
    """

    def kernel(x_ref, p_ref, o_ref):
        x = x_ref[...]
        acc = None
        for i, d in enumerate(needed_d):
            xd = x if d == 0 else pltpu.roll(x, shift=(-d) % 128, axis=1)
            term = xd * p_ref[i:i + 1, :]
            acc = term if acc is None else acc + term
        acc = acc + p_ref[n_d:n_d + 1, :]        # folded bias
        o_ref[...] = acc

    return kernel


def model_forward(x1, weight, bias, *, tile_rows=2048):
    """x1: (B, S, F) f32; weight: (out_f, in_f); bias: (out_f,) -> (B*F, out_f)."""
    B, S, F = x1.shape
    out_f, in_f = weight.shape
    assert S == in_f, "seq dim (after permute) must equal Linear in_features"
    assert out_f == in_f, "chaining the same Linear twice requires out == in features"

    GRP = S * F                      # values per batch element (input group size)
    assert GRP == F * out_f          # output group size must match (holds: out_f == in_f == S)
    assert 128 % GRP == 0, "group size must divide the 128-lane vreg width"
    GPB = 128 // GRP                 # batch elements packed per 128-lane row

    # ---- fold the two identical Linear layers:  x2 = v2 @ Wc^T + bc ----------
    # (exact in real arithmetic; f32 association differs negligibly for K=2)
    w = weight.astype(jnp.float32)
    b = bias.astype(jnp.float32)
    wc = w @ w                       # (out_f, in_f)
    bc = b @ w.T + b                 # (out_f,)

    # ---- absorb permute(0,2,1)+Flatten(0,1) into a GRPxGRP mixing matrix -----
    # x2d[b, s*F + f] = x1[b, s, f]  (free row-major reshape)
    # out2d[b, f*out_f + j] = bc[j] + sum_s x2d[b, s*F + f] * wc[j, s]
    T = jnp.zeros((GRP, GRP), jnp.float32)
    for s in range(S):
        for f in range(F):
            for j in range(out_f):
                T = T.at[s * F + f, f * out_f + j].set(wc[j, s])

    # ---- lane-periodic roll coefficients (structural sparsity pruned) --------
    needed_d = sorted({(s * F + f) - (f * out_f + j)
                       for s in range(S) for f in range(F) for j in range(out_f)})
    n_d = len(needed_d)
    k_lane = jnp.arange(128, dtype=jnp.int32) % GRP
    rows = []
    for d in needed_d:
        p_lane = k_lane + d
        valid = (p_lane >= 0) & (p_lane < GRP)      # also masks 128-lane wrap-around
        rows.append(jnp.where(valid, T[jnp.clip(p_lane, 0, GRP - 1), k_lane], 0.0))
    bc_grp = jnp.tile(bc, F)                        # (GRP,) folded bias per output group
    rows.append(jnp.tile(bc_grp, 128 // GRP))       # lane-periodic bias row
    params = jnp.stack(rows, axis=0).astype(jnp.float32)   # (n_d + 1, 128)

    # ---- lane-dense packing: (B, S, F) -> flat -> (n_rows_pad, 128) ----------
    n_rows = -(-B // GPB)                           # 128-lane rows needed
    tile_r = min(tile_rows, _round_up(max(1, n_rows // 4), 8))
    if tile_r >= n_rows:
        tile_r = n_rows                             # single full block (no 8-div constraint)
    n_rows_pad = _round_up(n_rows, tile_r)

    flat = x1.reshape(B * GRP).astype(jnp.float32)  # free, contiguous
    pad = n_rows_pad * 128 - B * GRP
    if pad:
        flat = jnp.pad(flat, (0, pad))              # tiny tail pad only (<= one tile)
    x_packed = flat.reshape(n_rows_pad, 128)

    kernel = _make_mix_kernel(needed_d, n_d)
    out_packed = pl.pallas_call(
        kernel,
        out_shape=jax.ShapeDtypeStruct((n_rows_pad, 128), jnp.float32),
        grid=(n_rows_pad // tile_r,),
        in_specs=[
            pl.BlockSpec((tile_r, 128), lambda r: (r, 0)),
            pl.BlockSpec((n_d + 1, 128), lambda r: (0, 0)),   # constant block: fetched once
        ],
        out_specs=pl.BlockSpec((tile_r, 128), lambda r: (r, 0)),
        compiler_params=pltpu.CompilerParams(
            dimension_semantics=("parallel",)),
    )(x_packed, params)

    # Padded tail lanes carry bias-only values; the slice below restores exact
    # module semantics (free when pad == 0, i.e. B % 32 == 0).
    return out_packed.reshape(-1)[:B * GRP].reshape(B * F, out_f)


def reference_forward(x1, weight, bias):
    B, S, F = x1.shape
    m = jnp.transpose(x1, (0, 2, 1)).reshape(B * F, S)
    v3 = m @ weight.T + bias
    return v3 @ weight.T + bias


if __name__ == "__main__":
    key = jax.random.PRNGKey(0)
    k_x, k_w, k_b, k_x2 = jax.random.split(key, 4)

    # Deterministic Linear(2, 2) params (PyTorch-style uniform init bound).
    bound = 1.0 / math.sqrt(2.0)
    weight = jax.random.uniform(k_w, (2, 2), jnp.float32, -bound, bound)
    bias = jax.random.uniform(k_b, (2,), jnp.float32, -bound, bound)

    # Case 1: exactly the spec's shape, x1 = (1, 2, 2)  (single (1,128) block).
    B, S, F = 1, 2, 2
    x1 = jax.random.normal(k_x, (B, S, F), dtype=jnp.float32)
    out = jax.block_until_ready(model_forward(x1, weight, bias))
    ref = reference_forward(x1, weight, bias)
    assert out.shape == (B * F, 2), out.shape
    assert jnp.allclose(out, ref, atol=1e-5, rtol=1e-5), (out, ref)

    # Case 2: larger batch -> multi-step row grid (3 tiles of 8 rows) + tail pad.
    B2 = 520
    x1b = jax.random.normal(k_x2, (B2, S, F), dtype=jnp.float32)
    out2 = jax.block_until_ready(model_forward(x1b, weight, bias))
    ref2 = reference_forward(x1b, weight, bias)
    assert out2.shape == (B2 * F, 2), out2.shape
    assert jnp.allclose(out2, ref2, atol=1e-5, rtol=1e-5)

    print("KERNEL_OK")
</pallas_src>

<mosaic_0001>
module attributes {stable_mosaic.version = 11 : i64} {
  func.func @kernel(%arg0: i32, %arg1: memref<1x128xf32, #tpu.memory_space<vmem>>, %arg2: memref<6x128xf32, #tpu.memory_space<vmem>>, %arg3: memref<1x128xf32, #tpu.memory_space<vmem>>) attributes {dimension_semantics = [#tpu.dimension_semantics<parallel>], iteration_bounds = array<i64: 1>, scalar_prefetch = 0 : i64, scratch_operands = 0 : i64, tpu.core_type = #tpu.core_type<tc>, window_params = [{transform_indices = @transform_0, window_bounds = array<i64: 1, 128>}, {pipeline_mode = #tpu.pipeline_mode<synchronous>, transform_indices = @transform_1, window_bounds = array<i64: 6, 128>}, {transform_indices = @transform_2, window_bounds = array<i64: 1, 128>}]} {
    %c0 = arith.constant 0 : index
    %c0_0 = arith.constant 0 : index
    %0 = vector.load %arg1[%c0, %c0_0] : memref<1x128xf32, #tpu.memory_space<vmem>>, vector<1x128xf32>
    %c2_i32 = arith.constant 2 : i32
    %1 = tpu.dynamic_rotate %0 by %c2_i32 dim 1 : vector<1x128xf32>, i32 -> vector<1x128xf32>
    %c0_1 = arith.constant 0 : index
    %c0_2 = arith.constant 0 : index
    %2 = vector.load %arg2[%c0_1, %c0_2] : memref<6x128xf32, #tpu.memory_space<vmem>>, vector<1x128xf32>
    %3 = arith.mulf %1, %2 : vector<1x128xf32>
    %c1_i32 = arith.constant 1 : i32
    %4 = tpu.dynamic_rotate %0 by %c1_i32 dim 1 : vector<1x128xf32>, i32 -> vector<1x128xf32>
    %c1 = arith.constant 1 : index
    %c0_3 = arith.constant 0 : index
    %5 = vector.load %arg2[%c1, %c0_3] : memref<6x128xf32, #tpu.memory_space<vmem>>, vector<1x128xf32>
    %6 = arith.mulf %4, %5 : vector<1x128xf32>
    %7 = arith.addf %3, %6 : vector<1x128xf32>
    %c2 = arith.constant 2 : index
    %c0_4 = arith.constant 0 : index
    %8 = vector.load %arg2[%c2, %c0_4] : memref<6x128xf32, #tpu.memory_space<vmem>>, vector<1x128xf32>
    %9 = arith.mulf %0, %8 : vector<1x128xf32>
    %10 = arith.addf %7, %9 : vector<1x128xf32>
    %c127_i32 = arith.constant 127 : i32
    %11 = tpu.dynamic_rotate %0 by %c127_i32 dim 1 : vector<1x128xf32>, i32 -> vector<1x128xf32>
    %c3 = arith.constant 3 : index
    %c0_5 = arith.constant 0 : index
    %12 = vector.load %arg2[%c3, %c0_5] : memref<6x128xf32, #tpu.memory_space<vmem>>, vector<1x128xf32>
    %13 = arith.mulf %11, %12 : vector<1x128xf32>
    %14 = arith.addf %10, %13 : vector<1x128xf32>
    %c126_i32 = arith.constant 126 : i32
    %15 = tpu.dynamic_rotate %0 by %c126_i32 dim 1 : vector<1x128xf32>, i32 -> vector<1x128xf32>
    %c4 = arith.constant 4 : index
    %c0_6 = arith.constant 0 : index
    %16 = vector.load %arg2[%c4, %c0_6] : memref<6x128xf32, #tpu.memory_space<vmem>>, vector<1x128xf32>
    %17 = arith.mulf %15, %16 : vector<1x128xf32>
    %18 = arith.addf %14, %17 : vector<1x128xf32>
    %c5 = arith.constant 5 : index
    %c0_7 = arith.constant 0 : index
    %19 = vector.load %arg2[%c5, %c0_7] : memref<6x128xf32, #tpu.memory_space<vmem>>, vector<1x128xf32>
    %20 = arith.addf %18, %19 : vector<1x128xf32>
    %c0_8 = arith.constant 0 : index
    %c0_9 = arith.constant 0 : index
    %21 = vector.load %arg3[%c0_8, %c0_9] : memref<1x128xf32, #tpu.memory_space<vmem>>, vector<1x128xf32>
    tpu.vector_store %arg3[%c0_8, %c0_9], %20 {strides = array<i32>} : memref<1x128xf32, #tpu.memory_space<vmem>>, vector<1x128xf32>,
    return
  }
  func.func @transform_0(%arg0: i32) -> (i32, i32) {
    %c0_i32 = arith.constant 0 : i32
    %c0_i32_0 = arith.constant 0 : i32
    return %arg0, %c0_i32 : i32, i32
  }
  func.func @transform_1(%arg0: i32) -> (i32, i32) {
    %c0_i32 = arith.constant 0 : i32
    %c0_i32_0 = arith.constant 0 : i32
    %c0_i32_1 = arith.constant 0 : i32
    return %c0_i32, %c0_i32_0 : i32, i32
  }
  func.func @transform_2(%arg0: i32) -> (i32, i32) {
    %c0_i32 = arith.constant 0 : i32
    %c0_i32_0 = arith.constant 0 : i32
    return %arg0, %c0_i32 : i32, i32
  }
}

</mosaic_0001>

<bundles_post_ra>
// kernel: tpu_custom_call.1
= control target key start
LH: loop header
LB: loop body
LE: loop exit
PB: predicated region body
PF: predicated region fallthrough
CT: control target
= control target key end

     0   :  { %7 = vsyncpa [#allocation3], 0  ;;  %s215_s0 = inlined_call_operand.hbm [shape: f32[1,128], index: 0, kind: input, shape index: {}]   ;;  %s216_s1 = inlined_call_operand.hbm [shape: f32[6,128], index: 1, kind: input, shape index: {}]   ;;  %s217_s2 = inlined_call_operand.hbm [shape: f32[1,128], index: 2, kind: output, shape index: {}]  }
   0x1   :  { %8 = vsyncpa [#allocation6], 0 }
   0x2   :  { %9 = vsyncpa [#allocation4], 0  ;;  %s157_s9 = smov [#allocation2]   ;;  %s158_s11 = smov [#allocation5]  }
   0x3   :  { %s16_s10 = sshll.u32 %s157_s9, 4  ;;  %s26_s12 = sshll.u32 %s158_s11, 4  ;;  %s17_s10 = int_to_ptr.vmem [resolvable:$true] %s16_s10  ;;  %s27_s12 = int_to_ptr.vmem [resolvable:$true] %s26_s12 }
   0x4   :  { %s85_s15 = scalar_lea.hbm %s215_s0, 16 }
   0x5   :  { %p86_p0 = scmp.ne.s32.totalorder %s215_s0, %s85_s15  ;;  %p89_p1 = scmp.lt.u32.totalorder %s85_s15, %s215_s0 }
   0x7   :  { %p91_p2 = pnand %p89_p1, %p86_p0 }
   0x9   :  { %94 = shalt.err (!%p91_p2)
}
   0xa   :  { %s95_s20 = scalar_lea.vmem %s17_s10, 16  ;;  %s99_s21 = scalar_lea.vmem %s17_s10, 32 }
   0xb   :  { %p96_p3 = scmp.ne.s32.totalorder %s17_s10, %s95_s20  ;;  %p100_p4 = scmp.lt.s32.totalorder %s17_s10, %s17_s10 }
   0xc   :  { %p101_p5 = scmp.lt.s32.totalorder %s99_s21, %s95_s20 }
   0xe   :  { %p102_p6 = por %p101_p5, %p100_p4 }
  0x10   :  { %p103_p7 = pnand %p102_p6, %p96_p3 }
  0x12   :  { %106 = shalt.err (!%p103_p7)
}
  0x13   :  { %19 = dma.hbm_to_vmem [thread:$0]  %s215_s0, 16, %s17_s10, [#allocation3]  }
  0x14   :  { %s107_s26 = scalar_lea.hbm %s216_s1, 128 }
  0x15   :  { %p108_p8 = scmp.ne.s32.totalorder %s216_s1, %s107_s26  ;;  %p111_p9 = scmp.lt.u32.totalorder %s107_s26, %s216_s1 }
  0x17   :  { %p113_p10 = pnand %p111_p9, %p108_p8 }
  0x19   :  { %116 = shalt.err (!%p113_p10)
}
  0x1a   :  { %s117_s3 = scalar_lea.vmem %s27_s12, 128  ;;  %p122_p12 = scmp.lt.s32.totalorder %s27_s12, %s27_s12 }
  0x1b   :  { %p118_p11 = scmp.ne.s32.totalorder %s27_s12, %s117_s3  ;;  %p123_p13 = scmp.lt.s32.totalorder %s117_s3, %s117_s3 }
  0x1d   :  { %p124_p0 = por %p123_p13, %p122_p12 }
  0x1f   :  { %p125_p1 = pnand %p124_p0, %p118_p11 }
  0x21   :  { %128 = shalt.err (!%p125_p1)
}
  0x22   :  { %29 = dma.hbm_to_vmem [thread:$0]  %s216_s1, 128, %s27_s12, [#allocation6]  }
  0x23   :  { %151 = dma.done.wait [#allocation3], 16  }
  0x24   :  { %152 = vsyncadd [#allocation3], 4294967280 }
  0x25   :  { %153 = dma.done.wait [#allocation6], 128  }
  0x26   :  { %154 = vsyncadd [#allocation6], 4294967168  ;;  %v36_v0 = vld [vmem:[#allocation2] sm:$0x1]  ;;  %s159_s5 = smov 2   ;;  %s160_s6 = smov 127  }
  0x27   :  { %37 = vrot.lane.b32.xlu0 %v36_v0, %s159_s5  ;;  %49 = vrot.lane.b32.xlu1 %v36_v0, %s160_s6  ;;  %s161_s7 = smov 1   ;;  %s162_s8 = smov 126   ;;  %v39_v3 = vld [vmem:[#allocation5] sm:$0x1]  ;;  %v43_v4 = vld [vmem:[#allocation5 + $0x1] sm:$0x1] }
  0x28   :  { %v46_v5 = vld [vmem:[#allocation5 + $0x2] sm:$0x1]  ;;  %v51_v10 = vld [vmem:[#allocation5 + $0x3] sm:$0x1]  ;;  %v56_v11 = vld [vmem:[#allocation5 + $0x4] sm:$0x1] }
  0x29   :  { %v47_v9 = vmul.f32 %v46_v5, %v36_v0  ;;  %v59_v18 = vld [vmem:[#allocation5 + $0x5] sm:$0x1]  ;;  %s163_s1 = smov [#allocation7]  }
  0x2a   :  { %s68_s9 = sshll.u32 %s163_s1, 4  ;;  %s69_s9 = int_to_ptr.vmem [resolvable:$true] %s68_s9 }
  0x2b   :  { %41 = vrot.lane.b32.xlu0 %v36_v0, %s161_s7  ;;  %54 = vrot.lane.b32.xlu1 %v36_v0, %s162_s8  ;;  %s129_s10 = scalar_lea.vmem %s69_s9, 16  ;;  %s133_s11 = scalar_lea.vmem %s69_s9, 32 }
  0x2c   :  { %p130_p2 = scmp.ne.s32.totalorder %s69_s9, %s129_s10  ;;  %p134_p3 = scmp.lt.s32.totalorder %s69_s9, %s69_s9 }
  0x2d   :  { %p135_p4 = scmp.lt.s32.totalorder %s133_s11, %s129_s10 }
  0x2f   :  { %p136_p5 = por %p135_p4, %p134_p3 }
  0x31   :  { %p137_p6 = pnand %p136_p5, %p130_p2 }
  0x99   :  { %v38_v1 = vpop.permute.xlu0 %37  ;;  %v50_v2 = vpop.permute.xlu1 %49 }
  0x9a   :  { %v40_v7 = vmul.f32 %v39_v3, %v38_v1  ;;  %v52_v15 = vmul.f32 %v51_v10, %v50_v2 }
  0x9d   :  { %v42_v6 = vpop.permute.xlu0 %41  ;;  %v55_v12 = vpop.permute.xlu1 %54 }
  0x9e   :  { %v44_v8 = vmul.f32 %v43_v4, %v42_v6  ;;  %v57_v16 = vmul.f32 %v56_v11, %v55_v12 }
  0xa0   :  { %v45_v13 = vadd.f32 %v44_v8, %v40_v7 }
  0xa2   :  { %v48_v14 = vadd.f32 %v47_v9, %v45_v13 }
  0xa4   :  { %v53_v17 = vadd.f32 %v52_v15, %v48_v14 }
  0xa6   :  { %v58_v19 = vadd.f32 %v57_v16, %v53_v17 }
  0xa8   :  { %v60_v20 = vadd.f32 %v59_v18, %v58_v19 }
  0xaa   :  { %61 = vst [vmem:[#allocation7] sm:$0x1] %v60_v20 }
  0xab   :  { %140 = shalt.err (!%p137_p6)
}
  0xac   :  { %s141_s14 = scalar_lea.hbm %s217_s2, 16 }
  0xad   :  { %p142_p7 = scmp.ne.s32.totalorder %s217_s2, %s141_s14  ;;  %p145_p8 = scmp.lt.u32.totalorder %s141_s14, %s217_s2 }
  0xaf   :  { %p147_p9 = pnand %p145_p8, %p142_p7 }
  0xb1   :  { %150 = shalt.err (!%p147_p9)
}
  0xb2   :  { %71 = dma.vmem_to_hbm [thread:$0]  %s69_s9, 16, %s217_s2, [#allocation4]  }
  0xb3   :  { %155 = dma.done.wait [#allocation4], 16  }
  0xb4   :  { %156 = vsyncadd [#allocation4], 4294967280 }
  0xb5   :  { %75 = vsyncpa [#allocation3], 1 }
  0xb6   :  { %76 = vsyncpa [#allocation6], 1 }
  0xb7   :  { %77 = vsyncpa [#allocation4], 1 }

</bundles_post_ra>
